<compile_context>
chip_gen: v7x
topology: tpu7x:2x2x1
jax: 0.10.0
libtpu: 0.0.40
codegen_flags: <defaults>
</compile_context>

<pallas_src>
import functools

import jax
import jax.numpy as jnp
from jax.experimental import pallas as pl
from jax.experimental.pallas import tpu as pltpu


def _round_up(n, m):
    return -(-n // m) * m


def _transfer_kernel(x_ref, w1_ref, wp_ref, bp_ref, out_ref, *,
                     hidden, num_domains, seg, mxu_bf16):
    H, D = hidden, num_domains
    dot_dt = jnp.bfloat16 if mxu_bf16 else jnp.float32

    x = x_ref[...].astype(dot_dt)
    w1 = w1_ref[...].astype(dot_dt)

    # Lane-128-aligned static slices of the packed buffers (free vreg selection).
    w2 = wp_ref[:, 0:H].astype(dot_dt)
    wc1 = wp_ref[:, seg:seg + H].astype(dot_dt)               # [wd1 | wt1]
    wc2 = wp_ref[:, 2 * seg:2 * seg + D + 1].astype(dot_dt)   # block-diag(wd2, wt2)
    b1 = bp_ref[:, 0:H]
    b2 = bp_ref[:, seg:seg + H]
    bc1 = bp_ref[:, 2 * seg:2 * seg + H]                      # [bd1 | bt1]
    bc2 = bp_ref[:, 3 * seg:3 * seg + D + 1]                  # [bd2 | bt2]

    # ---- feature extractor: Linear -> ReLU -> Linear -> ReLU ----
    h1 = jnp.maximum(jnp.dot(x, w1, preferred_element_type=jnp.float32) + b1, 0.0)
    feats = jnp.maximum(
        jnp.dot(h1.astype(dot_dt), w2, preferred_element_type=jnp.float32) + b2, 0.0)

    # ---- gradient reversal: identity in forward ----
    # TODO(synk): backward-pass (-alpha * grad) scaling has no forward-kernel equivalent.

    # ---- fused domain + task classifiers (one matmul per layer for both heads) ----
    c1 = jnp.maximum(
        jnp.dot(feats.astype(dot_dt), wc1, preferred_element_type=jnp.float32) + bc1, 0.0)
    logits = jnp.dot(c1.astype(dot_dt), wc2, preferred_element_type=jnp.float32) + bc2

    # Single unmasked lane-dense store: [domain | task | feats | zero-pad].
    bt = feats.shape[0]
    pad = out_ref.shape[1] - (D + 1 + H)
    pieces = [logits, feats]
    if pad > 0:
        pieces.append(jnp.zeros((bt, pad), jnp.float32))
    out_ref[...] = jnp.concatenate(pieces, axis=1)


def pack_params(params, num_domains):
    """Fuse classifier heads and pack params into 3 lane-128-aligned arrays.

    Call this ONCE when params are created/updated (hoisted out of the hot path).
    """
    H = params["w2"].shape[1]
    Hf = params["wd1"].shape[1]
    D = num_domains
    assert 2 * Hf == H, "hidden_dim must be even (heads use hidden_dim // 2)"

    seg_h = _round_up(H, 128)
    seg_d = _round_up(D + 1, 128)

    wc1 = jnp.concatenate([params["wd1"], params["wt1"]], axis=1)            # [H, H]
    bc1 = jnp.concatenate([params["bd1"], params["bt1"]], axis=1)            # [1, H]
    wc2 = jnp.zeros((H, D + 1), jnp.float32)
    wc2 = wc2.at[:Hf, :D].set(params["wd2"])
    wc2 = wc2.at[Hf:, D:].set(params["wt2"])                                 # [H, D+1]
    bc2 = jnp.concatenate([params["bd2"], params["bt2"]], axis=1)            # [1, D+1]

    def pad_to(a, width):
        return jnp.pad(a, ((0, 0), (0, width - a.shape[1])))

    w_pack = jnp.concatenate(
        [pad_to(params["w2"], seg_h), pad_to(wc1, seg_h), pad_to(wc2, seg_d)],
        axis=1)                                                              # [H, 2*seg_h+seg_d]
    b_pack = jnp.concatenate(
        [pad_to(params["b1"], seg_h), pad_to(params["b2"], seg_h),
         pad_to(bc1, seg_h), pad_to(bc2, seg_d)], axis=1)                    # [1, 3*seg_h+seg_d]

    return dict(w1=params["w1"], w_pack=w_pack, b_pack=b_pack,
                hidden=H, num_domains=D, seg=seg_h)


def _choose_tiling(batch):
    """Pick (batch_tile, padded_batch). Fat tiles; >=2 grid steps when batch allows."""
    MAX_TILE = 2048
    if batch >= 2 * MAX_TILE:
        bt = MAX_TILE
    elif batch >= 256:
        bt = _round_up((batch + 1) // 2, 8)    # ~batch/2: both v7x TCs get a step
    elif batch >= 8:
        bt = _round_up(batch, 8)               # single fat tile, sublane aligned
    else:
        bt = batch                             # tiny: block equals full array dim
    padded = _round_up(batch, bt)
    return bt, padded


def transfer_learning_forward(x, packed, *, mxu_bf16=False):
    """Forward pass in one Pallas kernel; returns (domain_out, task_out, features)."""
    batch, input_dim = x.shape
    H, D, seg = packed["hidden"], packed["num_domains"], packed["seg"]
    w1, w_pack, b_pack = packed["w1"], packed["w_pack"], packed["b_pack"]

    out_cols = _round_up(D + 1 + H, 128)                   # lane-dense output slab
    bt, padded_batch = _choose_tiling(batch)
    if padded_batch != batch:
        x = jnp.pad(x, ((0, padded_batch - batch), (0, 0)))
    grid = (padded_batch // bt,)

    kernel = functools.partial(_transfer_kernel, hidden=H, num_domains=D,
                               seg=seg, mxu_bf16=mxu_bf16)

    packed_out = pl.pallas_call(
        kernel,
        out_shape=jax.ShapeDtypeStruct((padded_batch, out_cols), jnp.float32),
        grid=grid,
        in_specs=[
            pl.BlockSpec((bt, input_dim), lambda i: (i, 0)),
            pl.BlockSpec(w1.shape, lambda i: (0, 0)),      # weights resident across tiles
            pl.BlockSpec(w_pack.shape, lambda i: (0, 0)),
            pl.BlockSpec(b_pack.shape, lambda i: (0, 0)),
        ],
        out_specs=pl.BlockSpec((bt, out_cols), lambda i: (i, 0)),
        compiler_params=pltpu.CompilerParams(
            dimension_semantics=("parallel",),
            vmem_limit_bytes=16 << 20,
        ),
    )(x, w1, w_pack, b_pack)

    domain_out = packed_out[:batch, :D]
    task_out = packed_out[:batch, D:D + 1]
    features = packed_out[:batch, D + 1:D + 1 + H]
    return domain_out, task_out, features


def init_params(key, input_dim, hidden_dim, num_domains):
    """Deterministic PyTorch-Linear-style init (uniform +/- 1/sqrt(fan_in))."""
    def linear(k, fan_in, fan_out):
        kw, kb = jax.random.split(k)
        bound = 1.0 / jnp.sqrt(jnp.float32(fan_in))
        w = jax.random.uniform(kw, (fan_in, fan_out), jnp.float32, -bound, bound)
        b = jax.random.uniform(kb, (1, fan_out), jnp.float32, -bound, bound)
        return w, b

    ks = jax.random.split(key, 6)
    half = hidden_dim // 2
    p = {}
    p["w1"], p["b1"] = linear(ks[0], input_dim, hidden_dim)
    p["w2"], p["b2"] = linear(ks[1], hidden_dim, hidden_dim)
    p["wd1"], p["bd1"] = linear(ks[2], hidden_dim, half)
    p["wd2"], p["bd2"] = linear(ks[3], half, num_domains)
    p["wt1"], p["bt1"] = linear(ks[4], hidden_dim, half)
    p["wt2"], p["bt2"] = linear(ks[5], half, 1)
    return p


if __name__ == "__main__":
    batch, input_dim, hidden_dim, num_domains = 8, 16, 32, 2

    key = jax.random.PRNGKey(0)
    kx, kp = jax.random.split(key)
    x = jax.random.normal(kx, (batch, input_dim), dtype=jnp.float32)
    params = init_params(kp, input_dim, hidden_dim, num_domains)

    # Pack once (hoisted out of the per-call path), then run the fused kernel.
    packed = pack_params(params, num_domains)
    jax.block_until_ready(packed)

    domain_out, task_out, feats = transfer_learning_forward(x, packed)
    jax.block_until_ready((domain_out, task_out, feats))

    # Sanity check vs. plain-JAX reference.
    relu = lambda v: jnp.maximum(v, 0.0)
    f_ref = relu(relu(x @ params["w1"] + params["b1"]) @ params["w2"] + params["b2"])
    d_ref = relu(f_ref @ params["wd1"] + params["bd1"]) @ params["wd2"] + params["bd2"]
    t_ref = relu(f_ref @ params["wt1"] + params["bt1"]) @ params["wt2"] + params["bt2"]
    assert jnp.allclose(feats, f_ref, atol=1e-5)
    assert jnp.allclose(domain_out, d_ref, atol=1e-5)
    assert jnp.allclose(task_out, t_ref, atol=1e-5)

    print("KERNEL_OK")
</pallas_src>

<mosaic_0001>
module attributes {stable_mosaic.version = 11 : i64} {
  func.func @_transfer_kernel(%arg0: i32, %arg1: memref<8x16xf32, #tpu.memory_space<vmem>>, %arg2: memref<16x32xf32, #tpu.memory_space<vmem>>, %arg3: memref<32x384xf32, #tpu.memory_space<vmem>>, %arg4: memref<1x512xf32, #tpu.memory_space<vmem>>, %arg5: memref<8x128xf32, #tpu.memory_space<vmem>>) attributes {dimension_semantics = [#tpu.dimension_semantics<parallel>], iteration_bounds = array<i64: 1>, scalar_prefetch = 0 : i64, scratch_operands = 0 : i64, tpu.core_type = #tpu.core_type<tc>, window_params = [{transform_indices = @transform_0, window_bounds = array<i64: 8, 16>}, {pipeline_mode = #tpu.pipeline_mode<synchronous>, transform_indices = @transform_1, window_bounds = array<i64: 16, 32>}, {pipeline_mode = #tpu.pipeline_mode<synchronous>, transform_indices = @transform_2, window_bounds = array<i64: 32, 384>}, {pipeline_mode = #tpu.pipeline_mode<synchronous>, transform_indices = @transform_3, window_bounds = array<i64: 1, 512>}, {transform_indices = @transform_4, window_bounds = array<i64: 8, 128>}]} {
    %c0 = arith.constant 0 : index
    %c0_0 = arith.constant 0 : index
    %0 = vector.load %arg1[%c0, %c0_0] : memref<8x16xf32, #tpu.memory_space<vmem>>, vector<8x16xf32>
    %c0_1 = arith.constant 0 : index
    %c0_2 = arith.constant 0 : index
    %1 = vector.load %arg2[%c0_1, %c0_2] : memref<16x32xf32, #tpu.memory_space<vmem>>, vector<16x32xf32>
    %c0_3 = arith.constant 0 : index
    %c0_4 = arith.constant 0 : index
    %2 = vector.load %arg3[%c0_3, %c0_4] : memref<32x384xf32, #tpu.memory_space<vmem>>, vector<32x32xf32>
    %c0_5 = arith.constant 0 : index
    %c128 = arith.constant 128 : index
    %3 = vector.load %arg3[%c0_5, %c128] : memref<32x384xf32, #tpu.memory_space<vmem>>, vector<32x32xf32>
    %c0_6 = arith.constant 0 : index
    %c256 = arith.constant 256 : index
    %4 = vector.load %arg3[%c0_6, %c256] : memref<32x384xf32, #tpu.memory_space<vmem>>, vector<32x3xf32>
    %c0_7 = arith.constant 0 : index
    %c0_8 = arith.constant 0 : index
    %5 = vector.load %arg4[%c0_7, %c0_8] : memref<1x512xf32, #tpu.memory_space<vmem>>, vector<1x32xf32>
    %c0_9 = arith.constant 0 : index
    %c128_10 = arith.constant 128 : index
    %6 = vector.load %arg4[%c0_9, %c128_10] : memref<1x512xf32, #tpu.memory_space<vmem>>, vector<1x32xf32>
    %c0_11 = arith.constant 0 : index
    %c256_12 = arith.constant 256 : index
    %7 = vector.load %arg4[%c0_11, %c256_12] : memref<1x512xf32, #tpu.memory_space<vmem>>, vector<1x32xf32>
    %c0_13 = arith.constant 0 : index
    %c384 = arith.constant 384 : index
    %8 = vector.load %arg4[%c0_13, %c384] : memref<1x512xf32, #tpu.memory_space<vmem>>, vector<1x3xf32>
    %cst = arith.constant dense<0.000000e+00> : vector<8x32xf32>
    %9 = tpu.matmul %0, %1, %cst {dimension_numbers = #tpu.dot_dimension_numbers<[1], [0], [0], [1], [0, 0, 1, 1], [], []>} : vector<8x16xf32>, vector<16x32xf32>, vector<8x32xf32> -> vector<8x32xf32>
    %10 = vector.broadcast %5 : vector<1x32xf32> to vector<8x32xf32>
    %11 = arith.addf %9, %10 : vector<8x32xf32>
    %cst_14 = arith.constant 0.000000e+00 : f32
    %12 = vector.broadcast %cst_14 : f32 to vector<8x32xf32>
    %13 = arith.maximumf %11, %12 : vector<8x32xf32>
    %cst_15 = arith.constant dense<0.000000e+00> : vector<8x32xf32>
    %14 = tpu.matmul %13, %2, %cst_15 {dimension_numbers = #tpu.dot_dimension_numbers<[1], [0], [0], [1], [0, 0, 1, 1], [], []>} : vector<8x32xf32>, vector<32x32xf32>, vector<8x32xf32> -> vector<8x32xf32>
    %15 = vector.broadcast %6 : vector<1x32xf32> to vector<8x32xf32>
    %16 = arith.addf %14, %15 : vector<8x32xf32>
    %cst_16 = arith.constant 0.000000e+00 : f32
    %17 = vector.broadcast %cst_16 : f32 to vector<8x32xf32>
    %18 = arith.maximumf %16, %17 : vector<8x32xf32>
    %cst_17 = arith.constant dense<0.000000e+00> : vector<8x32xf32>
    %19 = tpu.matmul %18, %3, %cst_17 {dimension_numbers = #tpu.dot_dimension_numbers<[1], [0], [0], [1], [0, 0, 1, 1], [], []>} : vector<8x32xf32>, vector<32x32xf32>, vector<8x32xf32> -> vector<8x32xf32>
    %20 = vector.broadcast %7 : vector<1x32xf32> to vector<8x32xf32>
    %21 = arith.addf %19, %20 : vector<8x32xf32>
    %cst_18 = arith.constant 0.000000e+00 : f32
    %22 = vector.broadcast %cst_18 : f32 to vector<8x32xf32>
    %23 = arith.maximumf %21, %22 : vector<8x32xf32>
    %cst_19 = arith.constant dense<0.000000e+00> : vector<8x3xf32>
    %24 = tpu.matmul %23, %4, %cst_19 {dimension_numbers = #tpu.dot_dimension_numbers<[1], [0], [0], [1], [0, 0, 1, 1], [], []>} : vector<8x32xf32>, vector<32x3xf32>, vector<8x3xf32> -> vector<8x3xf32>
    %25 = vector.broadcast %8 : vector<1x3xf32> to vector<8x3xf32>
    %26 = arith.addf %24, %25 : vector<8x3xf32>
    %cst_20 = arith.constant 0.000000e+00 : f32
    %27 = vector.broadcast %cst_20 : f32 to vector<8x93xf32>
    %28 = tpu.concatenate %26, %18, %27 in 1 : vector<8x3xf32>, vector<8x32xf32>, vector<8x93xf32> -> vector<8x128xf32>
    %c0_21 = arith.constant 0 : index
    %c0_22 = arith.constant 0 : index
    %29 = vector.load %arg5[%c0_21, %c0_22] : memref<8x128xf32, #tpu.memory_space<vmem>>, vector<8x128xf32>
    tpu.vector_store %arg5[%c0_21, %c0_22], %28 {strides = array<i32>} : memref<8x128xf32, #tpu.memory_space<vmem>>, vector<8x128xf32>,
    return
  }
  func.func @transform_0(%arg0: i32) -> (i32, i32) {
    %c0_i32 = arith.constant 0 : i32
    %c0_i32_0 = arith.constant 0 : i32
    return %arg0, %c0_i32 : i32, i32
  }
  func.func @transform_1(%arg0: i32) -> (i32, i32) {
    %c0_i32 = arith.constant 0 : i32
    %c0_i32_0 = arith.constant 0 : i32
    %c0_i32_1 = arith.constant 0 : i32
    return %c0_i32, %c0_i32_0 : i32, i32
  }
  func.func @transform_2(%arg0: i32) -> (i32, i32) {
    %c0_i32 = arith.constant 0 : i32
    %c0_i32_0 = arith.constant 0 : i32
    %c0_i32_1 = arith.constant 0 : i32
    return %c0_i32, %c0_i32_0 : i32, i32
  }
  func.func @transform_3(%arg0: i32) -> (i32, i32) {
    %c0_i32 = arith.constant 0 : i32
    %c0_i32_0 = arith.constant 0 : i32
    %c0_i32_1 = arith.constant 0 : i32
    return %c0_i32, %c0_i32_0 : i32, i32
  }
  func.func @transform_4(%arg0: i32) -> (i32, i32) {
    %c0_i32 = arith.constant 0 : i32
    %c0_i32_0 = arith.constant 0 : i32
    return %arg0, %c0_i32 : i32, i32
  }
}

</mosaic_0001>

<bundles_post_ra>
// kernel: tpu_custom_call.1
= control target key start
LH: loop header
LB: loop body
LE: loop exit
PB: predicated region body
PF: predicated region fallthrough
CT: control target
= control target key end

     0   :  { %9 = vsyncpa [#allocation3], 0  ;;  %s718_s0 = inlined_call_operand.hbm [shape: f32[8,16], index: 0, kind: input, shape index: {}]   ;;  %s719_s1 = inlined_call_operand.hbm [shape: f32[16,32], index: 1, kind: input, shape index: {}]   ;;  %s720_s2 = inlined_call_operand.hbm [shape: f32[32,384], index: 2, kind: input, shape index: {}]   ;;  %s721_s3 = inlined_call_operand.vmem [shape: f32[1,512], index: 3, kind: input, shape index: {}]   ;;  %s722_s4 = inlined_call_operand.hbm [shape: f32[8,128], index: 4, kind: output, shape index: {}]  }
   0x1   :  { %10 = vsyncpa [#allocation6], 0 }
   0x2   :  { %11 = vsyncpa [#allocation4], 0  ;;  %s614_s15 = smov [#allocation5]   ;;  %s520_s19 = scalar_lea.hbm %s719_s1, 256 }
   0x3   :  { %s27_s16 = sshll.u32 %s614_s15, 4  ;;  %p521_p0 = scmp.ne.s32.totalorder %s719_s1, %s520_s19  ;;  %s28_s16 = int_to_ptr.vmem [resolvable:$true] %s27_s16 }
   0x4   :  { %p524_p1 = scmp.lt.u32.totalorder %s520_s19, %s719_s1 }
   0x6   :  { %p526_p2 = pnand %p524_p1, %p521_p0 }
   0x8   :  { %529 = shalt.err (!%p526_p2)
}
   0x9   :  { %s530_s24 = scalar_lea.vmem %s28_s16, 256  ;;  %p535_p4 = scmp.lt.s32.totalorder %s28_s16, %s28_s16 }
   0xa   :  { %p531_p3 = scmp.ne.s32.totalorder %s28_s16, %s530_s24  ;;  %p536_p5 = scmp.lt.s32.totalorder %s530_s24, %s530_s24 }
   0xc   :  { %p537_p6 = por %p536_p5, %p535_p4 }
   0xe   :  { %p538_p7 = pnand %p537_p6, %p531_p3 }
  0x10   :  { %541 = shalt.err (!%p538_p7)
}
  0x11   :  { %s615_s25 = smov 128   ;;  %s616_s26 = smov 8  }
  0x12   :  { %33 = dma.hbm_to_vmem [thread:$0]  %s719_s1, 256, %s28_s16, [#allocation6], %s615_s25, %s615_s25, %s616_s26  }
  0x13   :  { %s617_s29 = smov [#allocation2]   ;;  %s618_s5 = smov [#allocation7]  }
  0x14   :  { %s18_s30 = sshll.u32 %s617_s29, 4  ;;  %s39_s6 = sshll.u32 %s618_s5, 4  ;;  %s19_s30 = int_to_ptr.vmem [resolvable:$true] %s18_s30  ;;  %s40_s6 = int_to_ptr.vmem [resolvable:$true] %s39_s6 }
  0x15   :  { %s542_s9 = scalar_lea.hbm %s718_s0, 128 }
  0x16   :  { %p543_p8 = scmp.ne.s32.totalorder %s718_s0, %s542_s9  ;;  %p546_p9 = scmp.lt.u32.totalorder %s542_s9, %s718_s0 }
  0x18   :  { %p548_p10 = pnand %p546_p9, %p543_p8 }
  0x1a   :  { %551 = shalt.err (!%p548_p10)
}
  0x1b   :  { %s552_s1 = scalar_lea.vmem %s19_s30, 128  ;;  %p557_p12 = scmp.lt.s32.totalorder %s19_s30, %s19_s30 }
  0x1c   :  { %p553_p11 = scmp.ne.s32.totalorder %s19_s30, %s552_s1  ;;  %p558_p13 = scmp.lt.s32.totalorder %s552_s1, %s552_s1 }
  0x1e   :  { %p559_p0 = por %p558_p13, %p557_p12 }
  0x20   :  { %p560_p1 = pnand %p559_p0, %p553_p11 }
  0x22   :  { %563 = shalt.err (!%p560_p1)
}
  0x23   :  { %21 = dma.hbm_to_vmem [thread:$0]  %s718_s0, 128, %s19_s30, [#allocation3]  }
  0x24   :  { %s564_s18 = scalar_lea.hbm %s720_s2, 1536 }
  0x25   :  { %p565_p2 = scmp.ne.s32.totalorder %s720_s2, %s564_s18  ;;  %p568_p3 = scmp.lt.u32.totalorder %s564_s18, %s720_s2 }
  0x27   :  { %p570_p4 = pnand %p568_p3, %p565_p2 }
  0x29   :  { %573 = shalt.err (!%p570_p4)
}
  0x2a   :  { %s574_s23 = scalar_lea.vmem %s40_s6, 1536  ;;  %p579_p6 = scmp.lt.s32.totalorder %s40_s6, %s40_s6 }
  0x2b   :  { %p575_p5 = scmp.ne.s32.totalorder %s40_s6, %s574_s23  ;;  %p580_p7 = scmp.lt.s32.totalorder %s574_s23, %s574_s23 }
  0x2d   :  { %p581_p8 = por %p580_p7, %p579_p6 }
  0x2f   :  { %p582_p9 = pnand %p581_p8, %p575_p5 }
  0x31   :  { %585 = shalt.err (!%p582_p9)
}
  0x32   :  { %s619_s0 = smov 384   ;;  %s620_s24 = smov 24  }
  0x33   :  { %45 = dma.hbm_to_vmem [thread:$0]  %s720_s2, 1536, %s40_s6, [#allocation6], %s619_s0, %s619_s0, %s620_s24  }
  0x34   :  { %608 = dma.done.wait [#allocation3], 128  }
  0x35   :  { %609 = vsyncadd [#allocation3], 4294967168 }
  0x36   :  { %610 = dma.done.wait [#allocation6], 1792  }
  0x37   :  { %611 = vsyncadd [#allocation6], 4294965504  ;;  %v621_v0 = vmov 0.0|0.0   ;;  %vm622_vm0 = vmmov 0   ;;  %v623_v1 = vmov 0.0   ;;  %v58_v2 = vld [vmem:[#allocation5] sm:$0xff] }
  0x38   :  { %487 = vmatprep.subr.bf16.mxu0 %v621_v0  ;;  %451 = vmatprep.mubr.msk.f32.mxu0 %vm622_vm0, %v623_v1  ;;  %v59_v3 = vld [vmem:[#allocation5 + $0x8] sm:$0xff]  ;;  %v60_v5 = vld [vmem:[#allocation7] sm:$0xff]  ;;  %v57_v8 = vld [vmem:[#allocation2] sm:$0xff]  ;;  %vm82_vm1 = vcmask 130048   ;;  %vm163_vm2 = vcmask 261120   ;;  %s624_s30 = smov 3  }
  0x39   :  { %490 = vmatprep.subr.bf16.mxu1 %v621_v0  ;;  %462 = vmatprep.mubr.msk.f32.mxu1 %vm622_vm0, %v623_v1  ;;  %v488_v4 = vpack.c.bf16 %v59_v3, %v58_v2  ;;  %v61_v6 = vld [vmem:[#allocation7 + $0x18] sm:$0xff]  ;;  %v62_v9 = vld [vmem:[#allocation7 + $0x30] sm:$0xff]  ;;  %v63_v10 = vld [vmem:[#allocation7 + $0x48] sm:$0xff]  ;;  %vm400_vm3 = vcmask 23552   ;;  %s625_s9 = smov [#allocation8]   ;;  %vm402_vm4 = vcmask 285696  }
  0x3a   :  { %v491_v7 = vpack.c.bf16 %v61_v6, %v60_v5  ;;  %v494_v11 = vpack.c.bf16 %v63_v10, %v62_v9  ;;  %v64_v12 = vld [vmem:[#allocation7 + $0x8] sm:$0xff]  ;;  %v65_v13 = vld [vmem:[#allocation7 + $0x20] sm:$0xff]  ;;  %v66_v20 = vld [vmem:[#allocation7 + $0x38] sm:$0xff]  ;;  %s411_s10 = sshll.u32 %s625_s9, 4  ;;  %s412_s10 = int_to_ptr.vmem [resolvable:$true] %s411_s10 }
  0x3b   :  { %489 = vmatpush3.bf16.msra.mxu0 %v488_v4  ;;  %v497_v14 = vpack.c.bf16 %v65_v13, %v64_v12  ;;  %v421_v15 = vld [vmem:[%s721_s3] ss:$0 sm:$0xff]  ;;  %v67_v21 = vld [vmem:[#allocation7 + $0x50] sm:$0xff]  ;;  %v423_v26 = vld [vmem:[%s721_s3 + $0x1] ss:$0 sm:$0xff]  ;;  %s586_s11 = scalar_lea.vmem %s412_s10, 128  ;;  %p591_p11 = scmp.lt.s32.totalorder %s412_s10, %s412_s10 }
  0x3c   :  { %492 = vmatpush3.bf16.msra.mxu1 %v491_v7  ;;  %496 = vmatprep.subr.bf16.mxu0 %v621_v0  ;;  %v500_v22 = vpack.c.bf16 %v67_v21, %v66_v20  ;;  %v68_v23 = vld [vmem:[#allocation7 + $0x10] sm:$0xff]  ;;  %v69_v24 = vld [vmem:[#allocation7 + $0x28] sm:$0xff]  ;;  %v70_v31 = vld [vmem:[#allocation7 + $0x40] sm:$0xff]  ;;  %p587_p10 = scmp.ne.s32.totalorder %s412_s10, %s586_s11  ;;  %p592_p12 = scmp.lt.s32.totalorder %s586_s11, %s586_s11 }
  0x3d   :  { %493 = vmatprep.subr.bf16.mxu1 %v621_v0  ;;  %v503_v25 = vpack.c.bf16 %v69_v24, %v68_v23  ;;  %v71_v32 = vld [vmem:[#allocation7 + $0x58] sm:$0xff]  ;;  %v425_v34 = vld [vmem:[%s721_s3 + $0x2] ss:$0 sm:$0xff]  ;;  %v427_v39 = vld [vmem:[%s721_s3 + $0x3] ss:$0 sm:$0xff] }
  0x3e   :  { %452 = vmatmul.mubr.msk.f32.vlgmr.msra.gmra.mrb[0].mxu0 %vm82_vm1, %v57_v8  ;;  %v506_v33 = vpack.c.bf16 %v71_v32, %v70_v31  ;;  %p593_p13 = por %p592_p12, %p591_p11 }
  0x3f   :  { %473 = vmatprep.mubr.msk.f32.mxu0 %vm622_vm0, %v623_v1  ;;  %498 = vmatpush3.bf16.msra.mxu0 %v497_v14 }
  0x40   :  { %495 = vmatpush3.bf16.msra.mxu1 %v494_v11  ;;  %499 = vmatprep.subr.bf16.mxu0 %v621_v0  ;;  %p594_p0 = pnand %p593_p13, %p587_p10 }
  0x41   :  { %502 = vmatprep.subr.bf16.mxu1 %v621_v0 }
  0x43   :  { %501 = vmatpush3.bf16.msra.mxu0 %v500_v22 }
 0x111   :  { %v152_v16 = vpop.f32.mrb[0].mxu0 }
 0x112   :  { %v153_v17 = vadd.f32 %v421_v15, %v152_v16  ;;  %v453_v18 = vpop.f32.mrb[1].mxu0 }
 0x114   :  { %v156_v19 = vmax.f32 %v153_v17, 0.0 }
 0x116   :  { %463 = vmatmul.mubr.msk.f32.vlgmr.msra.gmra.mrb[0].mxu1 %vm163_vm2, %v156_v19 }
 0x117   :  { %484 = vmatprep.mubr.msk.f32.mxu1 %vm622_vm0, %v623_v1  ;;  %504 = vmatpush3.bf16.msra.mxu1 %v503_v25 }
 0x118   :  { %505 = vmatprep.subr.bf16.mxu1 %v621_v0 }
 0x11b   :  { %507 = vmatpush3.bf16.msra.mxu1 %v506_v33 }
 0x1e9   :  { %v233_v27 = vpop.f32.mrb[0].mxu1 }
 0x1ea   :  { %v234_v28 = vadd.f32 %v423_v26, %v233_v27  ;;  %v464_v29 = vpop.f32.mrb[1].mxu1 }
 0x1ec   :  { %v237_v30 = vmax.f32 %v234_v28, 0.0 }
 0x1ee   :  { %474 = vmatmul.mubr.msk.f32.vlgmr.msra.gmra.mrb[2].mxu0 %vm163_vm2, %v237_v30  ;;  %397 = vrot.lane.b32.xlu0 %v237_v30, %s624_s30 }
 0x260   :  { %v398_v43 = vpop.permute.xlu0 %397 }
 0x2c1   :  { %v313_v35 = vpop.f32.mrb[2].mxu0 }
 0x2c2   :  { %v314_v36 = vadd.f32 %v425_v34, %v313_v35  ;;  %v475_v37 = vpop.f32.mrb[3].mxu0 }
 0x2c4   :  { %v317_v38 = vmax.f32 %v314_v36, 0.0 }
 0x2c6   :  { %485 = vmatmul.mubr.msk.f32.vlgmr.msra.gmra.mrb[2].mxu1 %vm163_vm2, %v317_v38 }
 0x399   :  { %v393_v40 = vpop.f32.mrb[2].mxu1 }
 0x39a   :  { %v394_v41 = vadd.f32 %v427_v39, %v393_v40  ;;  %v486_v42 = vpop.f32.mrb[3].mxu1 }
 0x39c   :  { %v401_v44 = vsel %vm400_vm3, %v394_v41, %v398_v43 }
 0x39d   :  { %v403_v45 = vsel %vm402_vm4, %v401_v44, 0.0 }
 0x39e   :  { %404 = vst [vmem:[#allocation8] sm:$0xff] %v403_v45 }
 0x39f   :  { %597 = shalt.err (!%p594_p0)
}
 0x3a0   :  { %s598_s13 = scalar_lea.hbm %s722_s4, 128 }
 0x3a1   :  { %p599_p1 = scmp.ne.s32.totalorder %s722_s4, %s598_s13  ;;  %p602_p2 = scmp.lt.u32.totalorder %s598_s13, %s722_s4 }
 0x3a3   :  { %p604_p3 = pnand %p602_p2, %p599_p1 }
 0x3a5   :  { %607 = shalt.err (!%p604_p3)
}
 0x3a6   :  { %414 = dma.vmem_to_hbm [thread:$0]  %s412_s10, 128, %s722_s4, [#allocation4]  }
 0x3a7   :  { %612 = dma.done.wait [#allocation4], 128  }
 0x3a8   :  { %613 = vsyncadd [#allocation4], 4294967168 }
 0x3a9   :  { %418 = vsyncpa [#allocation3], 1 }
 0x3aa   :  { %419 = vsyncpa [#allocation6], 1 }
 0x3ab   :  { %420 = vsyncpa [#allocation4], 1 }

</bundles_post_ra>
